<compile_context>
chip_gen: v7x
topology: tpu7x:2x2x1
jax: 0.10.0
libtpu: 0.0.40
codegen_flags: <defaults>
</compile_context>

<pallas_src>
import functools

import jax
import jax.numpy as jnp
from jax.experimental import pallas as pl
from jax.experimental.pallas import tpu as pltpu


def _round_up(x: int, m: int) -> int:
    return ((x + m - 1) // m) * m


def _cdiv(a: int, b: int) -> int:
    return -(-a // b)


def _vmem_capacity_bytes() -> int:
    """Per-generation physical VMEM (v5e/v6e: 128 MiB, v7x: 64 MiB per TC)."""
    try:
        return int(pltpu.get_tpu_info().vmem_capacity_bytes)
    except Exception:  # conservative (v7x-sized) fallback
        return 64 * 1024 * 1024


def _resident_spec(shape, index_map):
    """BlockSpec for a grid-invariant operand, single-buffered when supported."""
    buffered = getattr(pl, "Buffered", None)
    if buffered is not None:
        try:
            return pl.BlockSpec(shape, index_map, pipeline_mode=buffered(1))
        except TypeError:
            pass
    return pl.BlockSpec(shape, index_map)


# ---------------------------------------------------------------------------
# Kernels
# ---------------------------------------------------------------------------

def _fc_kernel_resident(feats_ref, w_ref, b_ref, x_ref):
    # feats_ref: (TM, D)   w_ref: (D, C)   b_ref: (1, C)   x_ref: (TM, C)
    acc = jnp.dot(feats_ref[...], w_ref[...],
                  preferred_element_type=jnp.float32)
    x_ref[...] = (acc + b_ref[...]).astype(x_ref.dtype)


def _fc_kernel_ktiled(feats_ref, w_ref, b_ref, x_ref, acc_ref):
    # feats_ref: (TM, TK)   w_ref: (TK, C)   b_ref: (1, C)
    # x_ref:     (TM, C)    acc_ref: (TM, C) f32 scratch
    k = pl.program_id(1)

    @pl.when(k == 0)
    def _():
        acc_ref[...] = jnp.zeros_like(acc_ref)

    acc_ref[...] += jnp.dot(feats_ref[...], w_ref[...],
                            preferred_element_type=jnp.float32)

    @pl.when(k == pl.num_programs(1) - 1)
    def _():
        x_ref[...] = (acc_ref[...] + b_ref[...]).astype(x_ref.dtype)


# ---------------------------------------------------------------------------
# Wrapper
# ---------------------------------------------------------------------------

@functools.partial(
    jax.jit,
    static_argnames=("target_tile_bytes", "compute_dtype", "k_tile"))
def fclayer_forward(feats, w, b, *, target_tile_bytes=2 * 1024 * 1024,
                    compute_dtype=None, k_tile=None):
    """FCLayer.forward: returns (feats, feats @ w + b).

    feats : (..., in_size)
    w     : (in_size, out_size)   -- PyTorch Linear weight, pre-transposed
    b     : (out_size,)
    compute_dtype : optional streaming dtype (e.g. jnp.bfloat16); f32 accum.
    k_tile : force the K-tiled path with this in_size tile (testing / huge FC).
    """
    *lead, D = feats.shape
    Dw, C = w.shape
    assert Dw == D, "weight in_size mismatch"
    out_dtype = feats.dtype

    x2 = feats.reshape(-1, D)
    M = x2.shape[0]
    if M == 0:   # empty-batch guard (zero-size grid otherwise)
        return feats, jnp.zeros((*lead, C), out_dtype)

    if compute_dtype is not None:
        # bf16 streaming halves HBM read bytes on the binding resource.
        x2 = x2.astype(compute_dtype)
        w = w.astype(compute_dtype)

    in_is = jnp.dtype(x2.dtype).itemsize
    w_is = jnp.dtype(w.dtype).itemsize
    b_is = jnp.dtype(b.dtype).itemsize
    out_is = jnp.dtype(out_dtype).itemsize

    b2 = b.reshape(1, C)

    # --- VMEM budget, per generation ---------------------------------------
    vmem_cap = _vmem_capacity_bytes()
    budget = max(4 * 1024 * 1024, vmem_cap - 2 * 1024 * 1024)

    w_bytes = D * C * w_is
    b_bytes = C * b_is
    # Fall back to K (in_size) tiling when a resident weight would eat the
    # VMEM needed to keep the feats stream pipelined (v7x: 64 MiB).
    use_ktiled = (k_tile is not None) or (w_bytes + b_bytes > budget // 2)

    if use_ktiled:
        if k_tile is not None:
            tk = _round_up(int(k_tile), 128)
        else:
            tk_max = max(128,
                         ((budget // 4) // max(1, 2 * C * w_is)) // 128 * 128)
            tk = max(128, min(_round_up(D, 128), tk_max, 2048))

    # --- Row tile: sized by bytes (MiB-scale), balanced across tiles -------
    tm_bytes_cap = max(8, _round_up(
        max(1, target_tile_bytes // max(1, D * in_is)), 8))
    if use_ktiled:
        per_row = 2 * (tk * in_is + C * out_is) + C * 4   # feats+out dbuf, acc
        fixed = 2 * tk * C * w_is + 2 * b_bytes
    else:
        per_row = 2 * (D * in_is + C * out_is)            # feats+out dbuf
        fixed = w_bytes + b_bytes                         # single-buffered
    tm_fit = max(8, ((budget - fixed) // max(1, per_row)) // 8 * 8)

    tm_target = max(8, min(tm_bytes_cap, tm_fit, _round_up(M, 8)))
    num_m = _cdiv(M, tm_target)
    tm = _round_up(_cdiv(M, num_m), 8)   # balanced: tm <= tm_target
    m_pad = num_m * tm
    if m_pad != M:
        x2 = jnp.pad(x2, ((0, m_pad - M), (0, 0)))

    # Advisory cost estimate so XLA schedules around the mem-bound call.
    cost = pl.CostEstimate(
        flops=2 * m_pad * D * C,
        transcendentals=0,
        bytes_accessed=(m_pad * D * in_is + D * C * w_is + C * b_is
                        + m_pad * C * out_is),
    )

    if use_ktiled:
        d_pad = _round_up(D, tk)
        if d_pad != D:   # zero-pad reduction dim; contributes zeros to the dot
            x2 = jnp.pad(x2, ((0, 0), (0, d_pad - D)))
            w = jnp.pad(w, ((0, d_pad - D), (0, 0)))
        num_k = d_pad // tk

        est = (2 * tm * tk * in_is + 2 * tk * C * w_is + 2 * b_bytes
               + 2 * tm * C * out_is + tm * C * 4)
        vmem_limit = int(min(vmem_cap,
                             max(16 * 1024 * 1024, est + 8 * 1024 * 1024)))

        out = pl.pallas_call(
            _fc_kernel_ktiled,
            out_shape=jax.ShapeDtypeStruct((m_pad, C), out_dtype),
            grid=(num_m, num_k),
            in_specs=[
                pl.BlockSpec((tm, tk), lambda i, k: (i, k)),   # feats tile
                pl.BlockSpec((tk, C), lambda i, k: (k, 0)),    # weight K-tile
                _resident_spec((1, C), lambda i, k: (0, 0)),   # bias
            ],
            out_specs=pl.BlockSpec((tm, C), lambda i, k: (i, 0)),
            scratch_shapes=[pltpu.VMEM((tm, C), jnp.float32)],
            compiler_params=pltpu.CompilerParams(
                dimension_semantics=("parallel", "arbitrary"),
                vmem_limit_bytes=vmem_limit,
            ),
            cost_estimate=cost,
        )(x2, w, b2)
    else:
        # Count weight/bias at x2 in the limit in case single-buffering is
        # unavailable in this JAX version (limit is just a cap).
        est = 2 * tm * (D * in_is + C * out_is) + 2 * (w_bytes + b_bytes)
        vmem_limit = int(min(vmem_cap,
                             max(16 * 1024 * 1024, est + 8 * 1024 * 1024)))

        out = pl.pallas_call(
            _fc_kernel_resident,
            out_shape=jax.ShapeDtypeStruct((m_pad, C), out_dtype),
            grid=(num_m,),
            in_specs=[
                pl.BlockSpec((tm, D), lambda i: (i, 0)),       # feats tile
                _resident_spec((D, C), lambda i: (0, 0)),      # weight
                _resident_spec((1, C), lambda i: (0, 0)),      # bias
            ],
            out_specs=pl.BlockSpec((tm, C), lambda i: (i, 0)),
            compiler_params=pltpu.CompilerParams(
                dimension_semantics=("parallel",),
                vmem_limit_bytes=vmem_limit,
            ),
            cost_estimate=cost,
        )(x2, w, b2)

    x = out[:M].reshape(*lead, C)
    return feats, x


if __name__ == "__main__":
    # Small shapes consistent with the module: 2 bags, 8 instances,
    # in_size=32, out_size=4.
    B, N, D, C = 2, 8, 32, 4

    key = jax.random.PRNGKey(0)
    k_feats, k_w, k_b = jax.random.split(key, 3)

    feats = jax.random.normal(k_feats, (B, N, D), jnp.float32)
    # PyTorch Linear stores weight as (out, in); we pass it transposed (in, out).
    w_torch = jax.random.normal(k_w, (C, D), jnp.float32) * 0.05
    w = w_torch.T                          # (D, C)
    b = jax.random.normal(k_b, (C,), jnp.float32) * 0.05

    feats_out, x_out = jax.block_until_ready(fclayer_forward(feats, w, b))

    x_ref = jnp.einsum("bnd,dc->bnc", feats, w, precision="highest") + b
    assert feats_out.shape == (B, N, D) and x_out.shape == (B, N, C)
    assert jnp.array_equal(feats_out, feats)            # identity pass-through
    assert jnp.allclose(x_out, x_ref, rtol=1e-5, atol=1e-5)

    # Also exercise the K-tiled (large in_size / v7x) path on small shapes.
    D2 = 256
    k2f, k2w = jax.random.split(jax.random.PRNGKey(1), 2)
    feats2 = jax.random.normal(k2f, (B, N, D2), jnp.float32)
    w2 = jax.random.normal(k2w, (C, D2), jnp.float32).T * 0.05   # (D2, C)
    _, x2_out = jax.block_until_ready(
        fclayer_forward(feats2, w2, b, k_tile=128))
    x2_ref = jnp.einsum("bnd,dc->bnc", feats2, w2, precision="highest") + b
    assert x2_out.shape == (B, N, C)
    assert jnp.allclose(x2_out, x2_ref, rtol=1e-5, atol=1e-4)

    print("KERNEL_OK")
</pallas_src>

<mosaic_0001>
module attributes {stable_mosaic.version = 11 : i64} {
  func.func @_fc_kernel_resident(%arg0: i32, %arg1: memref<16x32xf32, #tpu.memory_space<vmem>>, %arg2: memref<32x4xf32, #tpu.memory_space<vmem>>, %arg3: memref<1x4xf32, #tpu.memory_space<vmem>>, %arg4: memref<16x4xf32, #tpu.memory_space<vmem>>) attributes {dimension_semantics = [#tpu.dimension_semantics<parallel>], iteration_bounds = array<i64: 1>, scalar_prefetch = 0 : i64, scratch_operands = 0 : i64, tpu.core_type = #tpu.core_type<tc>, window_params = [{transform_indices = @transform_0, window_bounds = array<i64: 16, 32>}, {pipeline_mode = #tpu.pipeline_mode<synchronous>, transform_indices = @transform_1, window_bounds = array<i64: 32, 4>}, {pipeline_mode = #tpu.pipeline_mode<synchronous>, transform_indices = @transform_2, window_bounds = array<i64: 1, 4>}, {transform_indices = @transform_3, window_bounds = array<i64: 16, 4>}]} {
    %c0 = arith.constant 0 : index
    %c0_0 = arith.constant 0 : index
    %0 = vector.load %arg1[%c0, %c0_0] : memref<16x32xf32, #tpu.memory_space<vmem>>, vector<16x32xf32>
    %c0_1 = arith.constant 0 : index
    %c0_2 = arith.constant 0 : index
    %1 = vector.load %arg2[%c0_1, %c0_2] : memref<32x4xf32, #tpu.memory_space<vmem>>, vector<32x4xf32>
    %cst = arith.constant dense<0.000000e+00> : vector<16x4xf32>
    %2 = tpu.matmul %0, %1, %cst {dimension_numbers = #tpu.dot_dimension_numbers<[1], [0], [0], [1], [0, 0, 1, 1], [], []>} : vector<16x32xf32>, vector<32x4xf32>, vector<16x4xf32> -> vector<16x4xf32>
    %c0_3 = arith.constant 0 : index
    %c0_4 = arith.constant 0 : index
    %3 = vector.load %arg3[%c0_3, %c0_4] : memref<1x4xf32, #tpu.memory_space<vmem>>, vector<1x4xf32>
    %4 = vector.broadcast %3 : vector<1x4xf32> to vector<16x4xf32>
    %5 = arith.addf %2, %4 : vector<16x4xf32>
    %c0_5 = arith.constant 0 : index
    %c0_6 = arith.constant 0 : index
    %6 = vector.load %arg4[%c0_5, %c0_6] : memref<16x4xf32, #tpu.memory_space<vmem>>, vector<16x4xf32>
    tpu.vector_store %arg4[%c0_5, %c0_6], %5 {strides = array<i32>} : memref<16x4xf32, #tpu.memory_space<vmem>>, vector<16x4xf32>,
    return
  }
  func.func @transform_0(%arg0: i32) -> (i32, i32) {
    %c0_i32 = arith.constant 0 : i32
    %c0_i32_0 = arith.constant 0 : i32
    return %arg0, %c0_i32 : i32, i32
  }
  func.func @transform_1(%arg0: i32) -> (i32, i32) {
    %c0_i32 = arith.constant 0 : i32
    %c0_i32_0 = arith.constant 0 : i32
    %c0_i32_1 = arith.constant 0 : i32
    return %c0_i32, %c0_i32_0 : i32, i32
  }
  func.func @transform_2(%arg0: i32) -> (i32, i32) {
    %c0_i32 = arith.constant 0 : i32
    %c0_i32_0 = arith.constant 0 : i32
    %c0_i32_1 = arith.constant 0 : i32
    return %c0_i32, %c0_i32_0 : i32, i32
  }
  func.func @transform_3(%arg0: i32) -> (i32, i32) {
    %c0_i32 = arith.constant 0 : i32
    %c0_i32_0 = arith.constant 0 : i32
    return %arg0, %c0_i32 : i32, i32
  }
}

</mosaic_0001>

<bundles_post_ra>
// kernel: fclayer_forward.1
= control target key start
LH: loop header
LB: loop body
LE: loop exit
PB: predicated region body
PF: predicated region fallthrough
CT: control target
= control target key end

     0   :  { %vm27_vm0 = vcmask 261120   ;;  %vm109_vm1 = vcmask 31744   ;;  %s191_s1 = inlined_call_operand.vmem [shape: f32[32,4], index: 1, kind: input, shape index: {}]   ;;  %s192_s0 = inlined_call_operand.vmem [shape: f32[16,32], index: 0, kind: input, shape index: {}]   ;;  %s193_s2 = inlined_call_operand.vmem [shape: f32[1,4], index: 2, kind: input, shape index: {}]   ;;  %s194_s3 = inlined_call_operand.vmem [shape: f32[16,4], index: 3, kind: output, shape index: {}]  }
   0x1   :  { %v16_v0 = vld [vmem:[%s191_s1] sm:$0xff]  ;;  %v17_v1 = vld [vmem:[%s191_s1 + $0x8] sm:$0xff]  ;;  %v18_v2 = vld [vmem:[%s191_s1 + $0x10] sm:$0xff] }
   0x2   :  { %v136_v3 = vpack.c.bf16 %v17_v1, %v16_v0  ;;  %v19_v4 = vld [vmem:[%s191_s1 + $0x18] sm:$0xff]  ;;  %v14_v5 = vld [vmem:[%s192_s0] sm:$0xff]  ;;  %v15_v7 = vld [vmem:[%s192_s0 + $0x8] sm:$0xff] }
   0x3   :  { %v140_v6 = vpack.c.bf16 %v19_v4, %v18_v2  ;;  %133 = vmatprep.mubr.msk.f32.mxu0 %vm27_vm0, %v14_v5  ;;  %v116_v8 = vld [vmem:[%s193_s2] ss:$0 sm:$0xff] }
   0x4   :  { %137 = vmatprep.subr.bf16.mxu0 %v136_v3 }
   0x5   :  { %139 = vmatpush3.bf16.msra.mxu0 %v136_v3 }
   0x6   :  { %141 = vmatprep.subr.bf16.mxu0 %v140_v6 }
   0x9   :  { %143 = vmatpush3.bf16.msra.mxu0 %v140_v6 }
   0xc   :  { %134 = vmatmul.mubr.msk.f32.vlgmr.msra.gmra.mrb[0].mxu0 %vm27_vm0, %v15_v7 }
  0xdf   :  { %v135_v9 = vpop.f32.mrb[0].mxu0 }
  0xe0   :  { %v106_v10 = vadd.f32 %v135_v9, %v116_v8  ;;  %v100_v11 = vpop.f32.mrb[1].mxu0 }
  0xe1   :  { %v101_v12 = vadd.f32 %v116_v8, %v100_v11 }
  0xe2   :  { %111 = vst.msk [vmem:[%s194_s3 + $0x8] sm:$0xff] %vm109_vm1, %v106_v10 }
  0xe3   :  { %110 = vst.msk [vmem:[%s194_s3] sm:$0xff] %vm109_vm1, %v101_v12 }

</bundles_post_ra>
